<compile_context>
chip_gen: v7x
topology: tpu7x:2x2x1
jax: 0.10.0
libtpu: 0.0.40
codegen_flags: <defaults>
</compile_context>

<pallas_src>
import functools

import jax
import jax.numpy as jnp
from jax import lax
from jax.experimental import pallas as pl
from jax.experimental.pallas import tpu as pltpu


def _dilated_conv_kernel(x_ref, w_ref, b_ref, o_ref, col_ref, *,
                         kernel_size, dilation, n_adj, n_pts, batch_tile):
    # x_ref:   (batch_tile, C_in, N)        unpadded input tile
    # w_ref:   (C_out_pad, K*C_in)          taps fused into the contraction dim
    # b_ref:   (C_out_pad, 1)               bias (f32)
    # o_ref:   (batch_tile, C_out_pad, N)   output tile
    # col_ref: (K*C_in, batch_tile*N)       im2col scratch in VMEM
    c_in = x_ref.shape[1]
    pad = n_adj * dilation

    # Build the im2col operand in VMEM: row k*C_in + c holds channel c shifted
    # circularly by (k*dilation - pad).  Columns are grouped per batch element,
    # so the wrap never crosses a batch boundary.  All slices are static.
    for b in range(batch_tile):
        xb = x_ref[b]                                        # (C_in, N)
        col0 = b * n_pts
        for k in range(kernel_size):
            row0 = k * c_in
            s = (k * dilation - pad) % n_pts                 # static shift
            if s == 0:
                col_ref[row0:row0 + c_in, col0:col0 + n_pts] = xb
            else:
                col_ref[row0:row0 + c_in, col0:col0 + n_pts - s] = xb[:, s:]
                col_ref[row0:row0 + c_in, col0 + n_pts - s:col0 + n_pts] = xb[:, :s]

    # One fused MXU matmul over all taps and all batch elements in the tile,
    # accumulating in f32.
    acc = jnp.dot(w_ref[...], col_ref[...],
                  preferred_element_type=jnp.float32)        # (C_out_pad, bt*N)
    acc = acc + b_ref[...]                                   # in-kernel bias add

    for b in range(batch_tile):
        o_ref[b] = acc[:, b * n_pts:(b + 1) * n_pts].astype(o_ref.dtype)


def _pick_batch_tile(n_batch, per_batch_bytes, vmem_budget=8 << 20):
    # Largest divisor of B whose tile stays well under the scoped-VMEM default
    # on every generation (v7x has only 64 MiB physical / 32 MiB scoped VMEM).
    for d in range(n_batch, 0, -1):
        if n_batch % d == 0 and d * per_batch_bytes <= vmem_budget:
            return d
    return 1


def dilated_circular_conv(x, weight, bias, *, n_adj=4, dilation=1,
                          compute_dtype=None):
    """x: (B, C_in, N) NCW.  weight: (C_out, C_in, K=2*n_adj+1).  bias: (C_out,)."""
    B, C_in, N = x.shape
    C_out, C_in_w, K = weight.shape
    assert C_in_w == C_in and K == 2 * n_adj + 1
    pad = n_adj * dilation
    assert pad <= N, "circular pad wider than the contour is not supported"

    if compute_dtype is None:
        compute_dtype = x.dtype                 # keep module numerics by default
    out_dtype = x.dtype

    # Pack weight as (C_out_pad, K*C_in): column k*C_in + c <- weight[o, c, k].
    # Pad C_out up to a multiple of 8 for sublane-dense output stores.
    C_out_pad = ((C_out + 7) // 8) * 8
    w_f = jnp.transpose(weight, (0, 2, 1)).reshape(C_out, K * C_in)
    w_f = jnp.pad(w_f, ((0, C_out_pad - C_out), (0, 0))).astype(compute_dtype)
    b_f = jnp.pad(bias.reshape(C_out, 1).astype(jnp.float32),
                  ((0, C_out_pad - C_out), (0, 0)))
    x_c = x.astype(compute_dtype)

    itemsize = jnp.dtype(compute_dtype).itemsize
    per_batch_bytes = N * (itemsize * (2 * C_in + K * C_in) + 4 * 2 * C_out_pad)
    batch_tile = _pick_batch_tile(B, per_batch_bytes)
    grid = (B // batch_tile,)

    kernel = functools.partial(
        _dilated_conv_kernel, kernel_size=K, dilation=dilation, n_adj=n_adj,
        n_pts=N, batch_tile=batch_tile)

    out = pl.pallas_call(
        kernel,
        out_shape=jax.ShapeDtypeStruct((B, C_out_pad, N), out_dtype),
        grid_spec=pltpu.PrefetchScalarGridSpec(
            num_scalar_prefetch=0,
            grid=grid,
            in_specs=[
                pl.BlockSpec((batch_tile, C_in, N), lambda i: (i, 0, 0)),
                pl.BlockSpec((C_out_pad, K * C_in), lambda i: (0, 0)),
                pl.BlockSpec((C_out_pad, 1), lambda i: (0, 0)),
            ],
            out_specs=pl.BlockSpec((batch_tile, C_out_pad, N),
                                   lambda i: (i, 0, 0)),
            scratch_shapes=[
                pltpu.VMEM((K * C_in, batch_tile * N), compute_dtype)],
        ),
        compiler_params=pltpu.CompilerParams(
            dimension_semantics=("parallel",)),
    )(x_c, w_f, b_f)

    return out[:, :C_out, :]


def _reference(x, weight, bias, *, n_adj, dilation):
    # Pure-JAX reference: circular pad + lax 1D conv (NCW / OIW).
    pad = n_adj * dilation
    if n_adj != 0:
        x = jnp.concatenate([x[..., -pad:], x, x[..., :pad]], axis=2)
    y = lax.conv_general_dilated(
        x, weight, window_strides=(1,), padding="VALID",
        rhs_dilation=(dilation,),
        dimension_numbers=("NCH", "OIH", "NCH"))
    return y + bias.reshape(1, -1, 1)


if __name__ == "__main__":
    # Module config (matches DilatedCircularConv defaults): n_adj=4, dilation=1
    n_adj, dilation = 4, 1
    state_dim, out_state_dim = 4, 4
    B, N = 2, 16
    K = 2 * n_adj + 1

    key = jax.random.PRNGKey(0)
    kx, kw, kb = jax.random.split(key, 3)

    x = jax.random.normal(kx, (B, state_dim, N), dtype=jnp.float32)
    # Deterministic synthetic Conv1d params (same shapes as nn.Conv1d init).
    fan_in = state_dim * K
    bound = 1.0 / (fan_in ** 0.5)
    weight = jax.random.uniform(kw, (out_state_dim, state_dim, K),
                                minval=-bound, maxval=bound, dtype=jnp.float32)
    bias = jax.random.uniform(kb, (out_state_dim,),
                              minval=-bound, maxval=bound, dtype=jnp.float32)

    # f32 path (matches the PyTorch module numerics).
    out = dilated_circular_conv(x, weight, bias, n_adj=n_adj, dilation=dilation)
    out = jax.block_until_ready(out)
    ref = _reference(x, weight, bias, n_adj=n_adj, dilation=dilation)
    assert out.shape == (B, out_state_dim, N)
    assert jnp.allclose(out, ref, atol=1e-4, rtol=1e-4), "f32 mismatch vs reference conv"

    # bf16-input / f32-accumulate path (perf option from the review); compare
    # against a reference computed with bf16-rounded inputs.
    out_bf16 = dilated_circular_conv(x, weight, bias, n_adj=n_adj,
                                     dilation=dilation,
                                     compute_dtype=jnp.bfloat16)
    out_bf16 = jax.block_until_ready(out_bf16)
    ref_bf16 = _reference(x.astype(jnp.bfloat16).astype(jnp.float32),
                          weight.astype(jnp.bfloat16).astype(jnp.float32),
                          bias, n_adj=n_adj, dilation=dilation)
    assert jnp.allclose(out_bf16, ref_bf16, atol=1e-2, rtol=1e-2), "bf16 mismatch"

    print("KERNEL_OK")
</pallas_src>

<mosaic_0001>
module attributes {stable_mosaic.version = 11 : i64} {
  func.func @_dilated_conv_kernel(%arg0: i32, %arg1: memref<2x4x16xf32, #tpu.memory_space<vmem>>, %arg2: memref<8x36xf32, #tpu.memory_space<vmem>>, %arg3: memref<8x1xf32, #tpu.memory_space<vmem>>, %arg4: memref<2x8x16xf32, #tpu.memory_space<vmem>>, %arg5: memref<36x32xf32, #tpu.memory_space<vmem>>) attributes {dimension_semantics = [#tpu.dimension_semantics<parallel>], iteration_bounds = array<i64: 1>, scalar_prefetch = 0 : i64, scratch_operands = 1 : i64, tpu.core_type = #tpu.core_type<tc>, window_params = [{transform_indices = @transform_0, window_bounds = array<i64: 2, 4, 16>}, {pipeline_mode = #tpu.pipeline_mode<synchronous>, transform_indices = @transform_1, window_bounds = array<i64: 8, 36>}, {pipeline_mode = #tpu.pipeline_mode<synchronous>, transform_indices = @transform_2, window_bounds = array<i64: 8, 1>}, {transform_indices = @transform_3, window_bounds = array<i64: 2, 8, 16>}]} {
    %c0 = arith.constant 0 : index
    %c0_0 = arith.constant 0 : index
    %c0_1 = arith.constant 0 : index
    %0 = vector.load %arg1[%c0, %c0_0, %c0_1] : memref<2x4x16xf32, #tpu.memory_space<vmem>>, vector<1x4x16xf32>
    %1 = vector.shape_cast %0 : vector<1x4x16xf32> to vector<4x16xf32>
    %2 = vector.extract_strided_slice %1 {offsets = [0, 12], sizes = [4, 4], strides = [1, 1]} : vector<4x16xf32> to vector<4x4xf32>
    %c0_2 = arith.constant 0 : index
    %c0_3 = arith.constant 0 : index
    %3 = vector.load %arg5[%c0_2, %c0_3] : memref<36x32xf32, #tpu.memory_space<vmem>>, vector<4x4xf32>
    tpu.vector_store %arg5[%c0_2, %c0_3], %2 {strides = array<i32>} : memref<36x32xf32, #tpu.memory_space<vmem>>, vector<4x4xf32>,
    %4 = vector.extract_strided_slice %1 {offsets = [0, 0], sizes = [4, 12], strides = [1, 1]} : vector<4x16xf32> to vector<4x12xf32>
    %c0_4 = arith.constant 0 : index
    %c4 = arith.constant 4 : index
    %5 = vector.load %arg5[%c0_4, %c4] : memref<36x32xf32, #tpu.memory_space<vmem>>, vector<4x12xf32>
    tpu.vector_store %arg5[%c0_4, %c4], %4 {strides = array<i32>} : memref<36x32xf32, #tpu.memory_space<vmem>>, vector<4x12xf32>,
    %6 = vector.extract_strided_slice %1 {offsets = [0, 13], sizes = [4, 3], strides = [1, 1]} : vector<4x16xf32> to vector<4x3xf32>
    %c4_5 = arith.constant 4 : index
    %c0_6 = arith.constant 0 : index
    %7 = vector.load %arg5[%c4_5, %c0_6] : memref<36x32xf32, #tpu.memory_space<vmem>>, vector<4x3xf32>
    tpu.vector_store %arg5[%c4_5, %c0_6], %6 {strides = array<i32>} : memref<36x32xf32, #tpu.memory_space<vmem>>, vector<4x3xf32>,
    %8 = vector.extract_strided_slice %1 {offsets = [0, 0], sizes = [4, 13], strides = [1, 1]} : vector<4x16xf32> to vector<4x13xf32>
    %c4_7 = arith.constant 4 : index
    %c3 = arith.constant 3 : index
    %9 = vector.load %arg5[%c4_7, %c3] : memref<36x32xf32, #tpu.memory_space<vmem>>, vector<4x13xf32>
    tpu.vector_store %arg5[%c4_7, %c3], %8 {strides = array<i32>} : memref<36x32xf32, #tpu.memory_space<vmem>>, vector<4x13xf32>,
    %10 = vector.extract_strided_slice %1 {offsets = [0, 14], sizes = [4, 2], strides = [1, 1]} : vector<4x16xf32> to vector<4x2xf32>
    %c8 = arith.constant 8 : index
    %c0_8 = arith.constant 0 : index
    %11 = vector.load %arg5[%c8, %c0_8] : memref<36x32xf32, #tpu.memory_space<vmem>>, vector<4x2xf32>
    tpu.vector_store %arg5[%c8, %c0_8], %10 {strides = array<i32>} : memref<36x32xf32, #tpu.memory_space<vmem>>, vector<4x2xf32>,
    %12 = vector.extract_strided_slice %1 {offsets = [0, 0], sizes = [4, 14], strides = [1, 1]} : vector<4x16xf32> to vector<4x14xf32>
    %c8_9 = arith.constant 8 : index
    %c2 = arith.constant 2 : index
    %13 = vector.load %arg5[%c8_9, %c2] : memref<36x32xf32, #tpu.memory_space<vmem>>, vector<4x14xf32>
    tpu.vector_store %arg5[%c8_9, %c2], %12 {strides = array<i32>} : memref<36x32xf32, #tpu.memory_space<vmem>>, vector<4x14xf32>,
    %14 = vector.extract_strided_slice %1 {offsets = [0, 15], sizes = [4, 1], strides = [1, 1]} : vector<4x16xf32> to vector<4x1xf32>
    %c12 = arith.constant 12 : index
    %c0_10 = arith.constant 0 : index
    %15 = vector.load %arg5[%c12, %c0_10] : memref<36x32xf32, #tpu.memory_space<vmem>>, vector<4x1xf32>
    tpu.vector_store %arg5[%c12, %c0_10], %14 {strides = array<i32>} : memref<36x32xf32, #tpu.memory_space<vmem>>, vector<4x1xf32>,
    %16 = vector.extract_strided_slice %1 {offsets = [0, 0], sizes = [4, 15], strides = [1, 1]} : vector<4x16xf32> to vector<4x15xf32>
    %c12_11 = arith.constant 12 : index
    %c1 = arith.constant 1 : index
    %17 = vector.load %arg5[%c12_11, %c1] : memref<36x32xf32, #tpu.memory_space<vmem>>, vector<4x15xf32>
    tpu.vector_store %arg5[%c12_11, %c1], %16 {strides = array<i32>} : memref<36x32xf32, #tpu.memory_space<vmem>>, vector<4x15xf32>,
    %c16 = arith.constant 16 : index
    %c0_12 = arith.constant 0 : index
    %18 = vector.load %arg5[%c16, %c0_12] : memref<36x32xf32, #tpu.memory_space<vmem>>, vector<4x16xf32>
    tpu.vector_store %arg5[%c16, %c0_12], %1 {strides = array<i32>} : memref<36x32xf32, #tpu.memory_space<vmem>>, vector<4x16xf32>,
    %19 = vector.extract_strided_slice %1 {offsets = [0, 1], sizes = [4, 15], strides = [1, 1]} : vector<4x16xf32> to vector<4x15xf32>
    %c20 = arith.constant 20 : index
    %c0_13 = arith.constant 0 : index
    %20 = vector.load %arg5[%c20, %c0_13] : memref<36x32xf32, #tpu.memory_space<vmem>>, vector<4x15xf32>
    tpu.vector_store %arg5[%c20, %c0_13], %19 {strides = array<i32>} : memref<36x32xf32, #tpu.memory_space<vmem>>, vector<4x15xf32>,
    %21 = vector.extract_strided_slice %1 {offsets = [0, 0], sizes = [4, 1], strides = [1, 1]} : vector<4x16xf32> to vector<4x1xf32>
    %c20_14 = arith.constant 20 : index
    %c15 = arith.constant 15 : index
    %22 = vector.load %arg5[%c20_14, %c15] : memref<36x32xf32, #tpu.memory_space<vmem>>, vector<4x1xf32>
    tpu.vector_store %arg5[%c20_14, %c15], %21 {strides = array<i32>} : memref<36x32xf32, #tpu.memory_space<vmem>>, vector<4x1xf32>,
    %23 = vector.extract_strided_slice %1 {offsets = [0, 2], sizes = [4, 14], strides = [1, 1]} : vector<4x16xf32> to vector<4x14xf32>
    %c24 = arith.constant 24 : index
    %c0_15 = arith.constant 0 : index
    %24 = vector.load %arg5[%c24, %c0_15] : memref<36x32xf32, #tpu.memory_space<vmem>>, vector<4x14xf32>
    tpu.vector_store %arg5[%c24, %c0_15], %23 {strides = array<i32>} : memref<36x32xf32, #tpu.memory_space<vmem>>, vector<4x14xf32>,
    %25 = vector.extract_strided_slice %1 {offsets = [0, 0], sizes = [4, 2], strides = [1, 1]} : vector<4x16xf32> to vector<4x2xf32>
    %c24_16 = arith.constant 24 : index
    %c14 = arith.constant 14 : index
    %26 = vector.load %arg5[%c24_16, %c14] : memref<36x32xf32, #tpu.memory_space<vmem>>, vector<4x2xf32>
    tpu.vector_store %arg5[%c24_16, %c14], %25 {strides = array<i32>} : memref<36x32xf32, #tpu.memory_space<vmem>>, vector<4x2xf32>,
    %27 = vector.extract_strided_slice %1 {offsets = [0, 3], sizes = [4, 13], strides = [1, 1]} : vector<4x16xf32> to vector<4x13xf32>
    %c28 = arith.constant 28 : index
    %c0_17 = arith.constant 0 : index
    %28 = vector.load %arg5[%c28, %c0_17] : memref<36x32xf32, #tpu.memory_space<vmem>>, vector<4x13xf32>
    tpu.vector_store %arg5[%c28, %c0_17], %27 {strides = array<i32>} : memref<36x32xf32, #tpu.memory_space<vmem>>, vector<4x13xf32>,
    %29 = vector.extract_strided_slice %1 {offsets = [0, 0], sizes = [4, 3], strides = [1, 1]} : vector<4x16xf32> to vector<4x3xf32>
    %c28_18 = arith.constant 28 : index
    %c13 = arith.constant 13 : index
    %30 = vector.load %arg5[%c28_18, %c13] : memref<36x32xf32, #tpu.memory_space<vmem>>, vector<4x3xf32>
    tpu.vector_store %arg5[%c28_18, %c13], %29 {strides = array<i32>} : memref<36x32xf32, #tpu.memory_space<vmem>>, vector<4x3xf32>,
    %31 = vector.extract_strided_slice %1 {offsets = [0, 4], sizes = [4, 12], strides = [1, 1]} : vector<4x16xf32> to vector<4x12xf32>
    %c32 = arith.constant 32 : index
    %c0_19 = arith.constant 0 : index
    %32 = vector.load %arg5[%c32, %c0_19] : memref<36x32xf32, #tpu.memory_space<vmem>>, vector<4x12xf32>
    tpu.vector_store %arg5[%c32, %c0_19], %31 {strides = array<i32>} : memref<36x32xf32, #tpu.memory_space<vmem>>, vector<4x12xf32>,
    %33 = vector.extract_strided_slice %1 {offsets = [0, 0], sizes = [4, 4], strides = [1, 1]} : vector<4x16xf32> to vector<4x4xf32>
    %c32_20 = arith.constant 32 : index
    %c12_21 = arith.constant 12 : index
    %34 = vector.load %arg5[%c32_20, %c12_21] : memref<36x32xf32, #tpu.memory_space<vmem>>, vector<4x4xf32>
    tpu.vector_store %arg5[%c32_20, %c12_21], %33 {strides = array<i32>} : memref<36x32xf32, #tpu.memory_space<vmem>>, vector<4x4xf32>,
    %c1_22 = arith.constant 1 : index
    %c0_23 = arith.constant 0 : index
    %c0_24 = arith.constant 0 : index
    %35 = vector.load %arg1[%c1_22, %c0_23, %c0_24] : memref<2x4x16xf32, #tpu.memory_space<vmem>>, vector<1x4x16xf32>
    %36 = vector.shape_cast %35 : vector<1x4x16xf32> to vector<4x16xf32>
    %37 = vector.extract_strided_slice %36 {offsets = [0, 12], sizes = [4, 4], strides = [1, 1]} : vector<4x16xf32> to vector<4x4xf32>
    %c0_25 = arith.constant 0 : index
    %c16_26 = arith.constant 16 : index
    %38 = vector.load %arg5[%c0_25, %c16_26] : memref<36x32xf32, #tpu.memory_space<vmem>>, vector<4x4xf32>
    tpu.vector_store %arg5[%c0_25, %c16_26], %37 {strides = array<i32>} : memref<36x32xf32, #tpu.memory_space<vmem>>, vector<4x4xf32>,
    %39 = vector.extract_strided_slice %36 {offsets = [0, 0], sizes = [4, 12], strides = [1, 1]} : vector<4x16xf32> to vector<4x12xf32>
    %c0_27 = arith.constant 0 : index
    %c20_28 = arith.constant 20 : index
    %40 = vector.load %arg5[%c0_27, %c20_28] : memref<36x32xf32, #tpu.memory_space<vmem>>, vector<4x12xf32>
    tpu.vector_store %arg5[%c0_27, %c20_28], %39 {strides = array<i32>} : memref<36x32xf32, #tpu.memory_space<vmem>>, vector<4x12xf32>,
    %41 = vector.extract_strided_slice %36 {offsets = [0, 13], sizes = [4, 3], strides = [1, 1]} : vector<4x16xf32> to vector<4x3xf32>
    %c4_29 = arith.constant 4 : index
    %c16_30 = arith.constant 16 : index
    %42 = vector.load %arg5[%c4_29, %c16_30] : memref<36x32xf32, #tpu.memory_space<vmem>>, vector<4x3xf32>
    tpu.vector_store %arg5[%c4_29, %c16_30], %41 {strides = array<i32>} : memref<36x32xf32, #tpu.memory_space<vmem>>, vector<4x3xf32>,
    %43 = vector.extract_strided_slice %36 {offsets = [0, 0], sizes = [4, 13], strides = [1, 1]} : vector<4x16xf32> to vector<4x13xf32>
    %c4_31 = arith.constant 4 : index
    %c19 = arith.constant 19 : index
    %44 = vector.load %arg5[%c4_31, %c19] : memref<36x32xf32, #tpu.memory_space<vmem>>, vector<4x13xf32>
    tpu.vector_store %arg5[%c4_31, %c19], %43 {strides = array<i32>} : memref<36x32xf32, #tpu.memory_space<vmem>>, vector<4x13xf32>,
    %45 = vector.extract_strided_slice %36 {offsets = [0, 14], sizes = [4, 2], strides = [1, 1]} : vector<4x16xf32> to vector<4x2xf32>
    %c8_32 = arith.constant 8 : index
    %c16_33 = arith.constant 16 : index
    %46 = vector.load %arg5[%c8_32, %c16_33] : memref<36x32xf32, #tpu.memory_space<vmem>>, vector<4x2xf32>
    tpu.vector_store %arg5[%c8_32, %c16_33], %45 {strides = array<i32>} : memref<36x32xf32, #tpu.memory_space<vmem>>, vector<4x2xf32>,
    %47 = vector.extract_strided_slice %36 {offsets = [0, 0], sizes = [4, 14], strides = [1, 1]} : vector<4x16xf32> to vector<4x14xf32>
    %c8_34 = arith.constant 8 : index
    %c18 = arith.constant 18 : index
    %48 = vector.load %arg5[%c8_34, %c18] : memref<36x32xf32, #tpu.memory_space<vmem>>, vector<4x14xf32>
    tpu.vector_store %arg5[%c8_34, %c18], %47 {strides = array<i32>} : memref<36x32xf32, #tpu.memory_space<vmem>>, vector<4x14xf32>,
    %49 = vector.extract_strided_slice %36 {offsets = [0, 15], sizes = [4, 1], strides = [1, 1]} : vector<4x16xf32> to vector<4x1xf32>
    %c12_35 = arith.constant 12 : index
    %c16_36 = arith.constant 16 : index
    %50 = vector.load %arg5[%c12_35, %c16_36] : memref<36x32xf32, #tpu.memory_space<vmem>>, vector<4x1xf32>
    tpu.vector_store %arg5[%c12_35, %c16_36], %49 {strides = array<i32>} : memref<36x32xf32, #tpu.memory_space<vmem>>, vector<4x1xf32>,
    %51 = vector.extract_strided_slice %36 {offsets = [0, 0], sizes = [4, 15], strides = [1, 1]} : vector<4x16xf32> to vector<4x15xf32>
    %c12_37 = arith.constant 12 : index
    %c17 = arith.constant 17 : index
    %52 = vector.load %arg5[%c12_37, %c17] : memref<36x32xf32, #tpu.memory_space<vmem>>, vector<4x15xf32>
    tpu.vector_store %arg5[%c12_37, %c17], %51 {strides = array<i32>} : memref<36x32xf32, #tpu.memory_space<vmem>>, vector<4x15xf32>,
    %c16_38 = arith.constant 16 : index
    %c16_39 = arith.constant 16 : index
    %53 = vector.load %arg5[%c16_38, %c16_39] : memref<36x32xf32, #tpu.memory_space<vmem>>, vector<4x16xf32>
    tpu.vector_store %arg5[%c16_38, %c16_39], %36 {strides = array<i32>} : memref<36x32xf32, #tpu.memory_space<vmem>>, vector<4x16xf32>,
    %54 = vector.extract_strided_slice %36 {offsets = [0, 1], sizes = [4, 15], strides = [1, 1]} : vector<4x16xf32> to vector<4x15xf32>
    %c20_40 = arith.constant 20 : index
    %c16_41 = arith.constant 16 : index
    %55 = vector.load %arg5[%c20_40, %c16_41] : memref<36x32xf32, #tpu.memory_space<vmem>>, vector<4x15xf32>
    tpu.vector_store %arg5[%c20_40, %c16_41], %54 {strides = array<i32>} : memref<36x32xf32, #tpu.memory_space<vmem>>, vector<4x15xf32>,
    %56 = vector.extract_strided_slice %36 {offsets = [0, 0], sizes = [4, 1], strides = [1, 1]} : vector<4x16xf32> to vector<4x1xf32>
    %c20_42 = arith.constant 20 : index
    %c31 = arith.constant 31 : index
    %57 = vector.load %arg5[%c20_42, %c31] : memref<36x32xf32, #tpu.memory_space<vmem>>, vector<4x1xf32>
    tpu.vector_store %arg5[%c20_42, %c31], %56 {strides = array<i32>} : memref<36x32xf32, #tpu.memory_space<vmem>>, vector<4x1xf32>,
    %58 = vector.extract_strided_slice %36 {offsets = [0, 2], sizes = [4, 14], strides = [1, 1]} : vector<4x16xf32> to vector<4x14xf32>
    %c24_43 = arith.constant 24 : index
    %c16_44 = arith.constant 16 : index
    %59 = vector.load %arg5[%c24_43, %c16_44] : memref<36x32xf32, #tpu.memory_space<vmem>>, vector<4x14xf32>
    tpu.vector_store %arg5[%c24_43, %c16_44], %58 {strides = array<i32>} : memref<36x32xf32, #tpu.memory_space<vmem>>, vector<4x14xf32>,
    %60 = vector.extract_strided_slice %36 {offsets = [0, 0], sizes = [4, 2], strides = [1, 1]} : vector<4x16xf32> to vector<4x2xf32>
    %c24_45 = arith.constant 24 : index
    %c30 = arith.constant 30 : index
    %61 = vector.load %arg5[%c24_45, %c30] : memref<36x32xf32, #tpu.memory_space<vmem>>, vector<4x2xf32>
    tpu.vector_store %arg5[%c24_45, %c30], %60 {strides = array<i32>} : memref<36x32xf32, #tpu.memory_space<vmem>>, vector<4x2xf32>,
    %62 = vector.extract_strided_slice %36 {offsets = [0, 3], sizes = [4, 13], strides = [1, 1]} : vector<4x16xf32> to vector<4x13xf32>
    %c28_46 = arith.constant 28 : index
    %c16_47 = arith.constant 16 : index
    %63 = vector.load %arg5[%c28_46, %c16_47] : memref<36x32xf32, #tpu.memory_space<vmem>>, vector<4x13xf32>
    tpu.vector_store %arg5[%c28_46, %c16_47], %62 {strides = array<i32>} : memref<36x32xf32, #tpu.memory_space<vmem>>, vector<4x13xf32>,
    %64 = vector.extract_strided_slice %36 {offsets = [0, 0], sizes = [4, 3], strides = [1, 1]} : vector<4x16xf32> to vector<4x3xf32>
    %c28_48 = arith.constant 28 : index
    %c29 = arith.constant 29 : index
    %65 = vector.load %arg5[%c28_48, %c29] : memref<36x32xf32, #tpu.memory_space<vmem>>, vector<4x3xf32>
    tpu.vector_store %arg5[%c28_48, %c29], %64 {strides = array<i32>} : memref<36x32xf32, #tpu.memory_space<vmem>>, vector<4x3xf32>,
    %66 = vector.extract_strided_slice %36 {offsets = [0, 4], sizes = [4, 12], strides = [1, 1]} : vector<4x16xf32> to vector<4x12xf32>
    %c32_49 = arith.constant 32 : index
    %c16_50 = arith.constant 16 : index
    %67 = vector.load %arg5[%c32_49, %c16_50] : memref<36x32xf32, #tpu.memory_space<vmem>>, vector<4x12xf32>
    tpu.vector_store %arg5[%c32_49, %c16_50], %66 {strides = array<i32>} : memref<36x32xf32, #tpu.memory_space<vmem>>, vector<4x12xf32>,
    %68 = vector.extract_strided_slice %36 {offsets = [0, 0], sizes = [4, 4], strides = [1, 1]} : vector<4x16xf32> to vector<4x4xf32>
    %c32_51 = arith.constant 32 : index
    %c28_52 = arith.constant 28 : index
    %69 = vector.load %arg5[%c32_51, %c28_52] : memref<36x32xf32, #tpu.memory_space<vmem>>, vector<4x4xf32>
    tpu.vector_store %arg5[%c32_51, %c28_52], %68 {strides = array<i32>} : memref<36x32xf32, #tpu.memory_space<vmem>>, vector<4x4xf32>,
    %c0_53 = arith.constant 0 : index
    %c0_54 = arith.constant 0 : index
    %70 = vector.load %arg2[%c0_53, %c0_54] : memref<8x36xf32, #tpu.memory_space<vmem>>, vector<8x36xf32>
    %c0_55 = arith.constant 0 : index
    %c0_56 = arith.constant 0 : index
    %71 = vector.load %arg5[%c0_55, %c0_56] : memref<36x32xf32, #tpu.memory_space<vmem>>, vector<36x32xf32>
    %cst = arith.constant dense<0.000000e+00> : vector<8x32xf32>
    %72 = tpu.matmul %70, %71, %cst {dimension_numbers = #tpu.dot_dimension_numbers<[1], [0], [0], [1], [0, 0, 1, 1], [], []>} : vector<8x36xf32>, vector<36x32xf32>, vector<8x32xf32> -> vector<8x32xf32>
    %c0_57 = arith.constant 0 : index
    %c0_58 = arith.constant 0 : index
    %73 = vector.load %arg3[%c0_57, %c0_58] : memref<8x1xf32, #tpu.memory_space<vmem>>, vector<8x1xf32>
    %74 = vector.broadcast %73 : vector<8x1xf32> to vector<8x32xf32>
    %75 = arith.addf %72, %74 : vector<8x32xf32>
    %76 = vector.extract_strided_slice %75 {offsets = [0, 0], sizes = [8, 16], strides = [1, 1]} : vector<8x32xf32> to vector<8x16xf32>
    %c0_59 = arith.constant 0 : index
    %c0_60 = arith.constant 0 : index
    %c0_61 = arith.constant 0 : index
    %77 = vector.load %arg4[%c0_59, %c0_60, %c0_61] : memref<2x8x16xf32, #tpu.memory_space<vmem>>, vector<1x8x16xf32>
    %78 = vector.shape_cast %77 : vector<1x8x16xf32> to vector<8x16xf32>
    %79 = vector.shape_cast %76 : vector<8x16xf32> to vector<1x8x16xf32>
    tpu.vector_store %arg4[%c0_59, %c0_60, %c0_61], %79 {strides = array<i32>} : memref<2x8x16xf32, #tpu.memory_space<vmem>>, vector<1x8x16xf32>,
    %80 = vector.extract_strided_slice %75 {offsets = [0, 16], sizes = [8, 16], strides = [1, 1]} : vector<8x32xf32> to vector<8x16xf32>
    %c1_62 = arith.constant 1 : index
    %c0_63 = arith.constant 0 : index
    %c0_64 = arith.constant 0 : index
    %81 = vector.load %arg4[%c1_62, %c0_63, %c0_64] : memref<2x8x16xf32, #tpu.memory_space<vmem>>, vector<1x8x16xf32>
    %82 = vector.shape_cast %81 : vector<1x8x16xf32> to vector<8x16xf32>
    %83 = vector.shape_cast %80 : vector<8x16xf32> to vector<1x8x16xf32>
    tpu.vector_store %arg4[%c1_62, %c0_63, %c0_64], %83 {strides = array<i32>} : memref<2x8x16xf32, #tpu.memory_space<vmem>>, vector<1x8x16xf32>,
    return
  }
  func.func @transform_0(%arg0: i32) -> (i32, i32, i32) {
    %c0_i32 = arith.constant 0 : i32
    %c0_i32_0 = arith.constant 0 : i32
    %c0_i32_1 = arith.constant 0 : i32
    return %arg0, %c0_i32, %c0_i32_0 : i32, i32, i32
  }
  func.func @transform_1(%arg0: i32) -> (i32, i32) {
    %c0_i32 = arith.constant 0 : i32
    %c0_i32_0 = arith.constant 0 : i32
    %c0_i32_1 = arith.constant 0 : i32
    return %c0_i32, %c0_i32_0 : i32, i32
  }
  func.func @transform_2(%arg0: i32) -> (i32, i32) {
    %c0_i32 = arith.constant 0 : i32
    %c0_i32_0 = arith.constant 0 : i32
    %c0_i32_1 = arith.constant 0 : i32
    return %c0_i32, %c0_i32_0 : i32, i32
  }
  func.func @transform_3(%arg0: i32) -> (i32, i32, i32) {
    %c0_i32 = arith.constant 0 : i32
    %c0_i32_0 = arith.constant 0 : i32
    %c0_i32_1 = arith.constant 0 : i32
    return %arg0, %c0_i32, %c0_i32_0 : i32, i32, i32
  }
}

</mosaic_0001>

<bundles_post_ra>
// kernel: tpu_custom_call.1
= control target key start
LH: loop header
LB: loop body
LE: loop exit
PB: predicated region body
PF: predicated region fallthrough
CT: control target
= control target key end

     0   :  { %8 = vsyncpa [#allocation4], 0  ;;  %s517_s0 = inlined_call_operand.vmem [shape: f32[2,4,16], index: 0, kind: input, shape index: {}]   ;;  %s518_s1 = inlined_call_operand.hbm [shape: f32[8,36], index: 1, kind: input, shape index: {}]   ;;  %s519_s2 = inlined_call_operand.vmem [shape: f32[8,1], index: 2, kind: input, shape index: {}]   ;;  %s520_s3 = inlined_call_operand.hbm [shape: f32[2,8,16], index: 3, kind: output, shape index: {}]  }
   0x1   :  { %9 = vsyncpa [#allocation5], 0  ;;  %s426_s12 = smov [#allocation3]   ;;  %s378_s16 = scalar_lea.hbm %s518_s1, 128 }
   0x2   :  { %s18_s13 = sshll.u32 %s426_s12, 4  ;;  %p379_p0 = scmp.ne.s32.totalorder %s518_s1, %s378_s16  ;;  %s19_s13 = int_to_ptr.vmem [resolvable:$true] %s18_s13 }
   0x3   :  { %p382_p1 = scmp.lt.u32.totalorder %s378_s16, %s518_s1 }
   0x5   :  { %p384_p2 = pnand %p382_p1, %p379_p0 }
   0x7   :  { %387 = shalt.err (!%p384_p2)
}
   0x8   :  { %s388_s21 = scalar_lea.vmem %s19_s13, 128  ;;  %p393_p4 = scmp.lt.s32.totalorder %s19_s13, %s19_s13 }
   0x9   :  { %p389_p3 = scmp.ne.s32.totalorder %s19_s13, %s388_s21  ;;  %p394_p5 = scmp.lt.s32.totalorder %s388_s21, %s388_s21 }
   0xb   :  { %p395_p6 = por %p394_p5, %p393_p4 }
   0xd   :  { %p396_p7 = pnand %p395_p6, %p389_p3 }
   0xf   :  { %399 = shalt.err (!%p396_p7)
}
  0x10   :  { %21 = dma.hbm_to_vmem [thread:$0]  %s518_s1, 128, %s19_s13, [#allocation4]  }
  0x11   :  { %422 = dma.done.wait [#allocation4], 128  }
  0x12   :  { %423 = vsyncadd [#allocation4], 4294967168  ;;  %v27_v0 = vld [vmem:[%s517_s0] sm:$0xf]  ;;  %s427_s26 = smov 114   ;;  %s428_s27 = smov 116  }
  0x13   :  { %49 = vrot.lane.b32.xlu1 %v27_v0, %s427_s26  ;;  %29 = vrot.lane.b32.xlu0 %v27_v0, %s428_s27  ;;  %s429_s28 = smov 113   ;;  %s430_s29 = smov 115   ;;  %v314_v1 = vld [vmem:[%s517_s0 + $0x4] sm:$0xf]  ;;  %v437_v2 = vmov 0.0|0.0   ;;  %vm69_vm0 = vcmask 125952  }
  0x14   :  { %s431_s30 = smov 3   ;;  %s432_s4 = smov 4   ;;  %336 = vmatprep.subr.bf16.mxu0 %v437_v2  ;;  %70 = vst.msk [vmem:[#allocation2 + $0x10] sm:$0xf] %vm69_vm0, %v27_v0  ;;  %vm451_vm1 = vmmov 0   ;;  %v452_v3 = vmov 0.0  }
  0x15   :  { %s433_s5 = smov 1   ;;  %s434_s1 = smov 2   ;;  %333 = vmatprep.mubr.msk.f32.mxu0 %vm451_vm1, %v452_v3  ;;  %v454_v4 = vmov 0   ;;  %v205_v5 = vld [vmem:[%s519_s2] sm:$0xff]  ;;  %vm52_vm2 = vcmask 11264   ;;  %vm32_vm3 = vcmask 27648  }
  0x16   :  { %s435_s8 = smov 19   ;;  %s436_s9 = smov 20   ;;  %376 = vset.pattern.permute.xlu1 %v454_v4  ;;  %377 = vset.pattern.permute.xlu0 %v454_v4  ;;  %vm62_vm4 = vcmask 3072   ;;  %vm42_vm5 = vcmask 19456   ;;  %vm47_vm6 = vcmask 125976   ;;  %vm37_vm7 = vcmask 125984  }
  0x17   :  { %59 = vrot.lane.b32.xlu1 %v27_v0, %s429_s28  ;;  %39 = vrot.lane.b32.xlu0 %v27_v0, %s430_s29  ;;  %s438_s10 = smov 17   ;;  %s439_s11 = smov 18   ;;  %vm67_vm8 = vcmask 125960   ;;  %vm57_vm9 = vcmask 125968   ;;  %vm127_vm10 = vcmask 150656   ;;  %vm117_vm11 = vcmask 158848  }
  0x18   :  { %s440_s12 = smov 127   ;;  %s441_s13 = smov 126   ;;  %vm147_vm12 = vcmask 134272   ;;  %vm137_vm13 = vcmask 142464   ;;  %vm132_vm14 = vcmask 257176   ;;  %vm122_vm15 = vcmask 257184  }
  0x19   :  { %s442_s0 = smov 125   ;;  %s443_s14 = smov 15   ;;  %vm152_vm0 = vcmask 257160   ;;  %vm142_vm1 = vcmask 257168   ;;  %v199_v45 = vld [vmem:[#allocation3] sm:$0xff] }
  0x1a   :  { %s444_s15 = smov 14   ;;  %s445_s16 = smov 13  }
  0x1b   :  { %44 = vrot.lane.b32.xlu1 %v27_v0, %s431_s30  ;;  %34 = vrot.lane.b32.xlu0 %v27_v0, %s432_s4  ;;  %s446_s17 = smov 16   ;;  %s447_s18 = smov 31  }
  0x1c   :  { %s448_s19 = smov 30   ;;  %s449_s20 = smov 29  }
  0x1d   :  { %s450_s21 = smov 124   ;;  %s453_s22 = smov 12  }
  0x1e   :  { %s455_s25 = smov 28   ;;  %s456_s2 = smov 112  }
  0x1f   :  { %64 = vrot.lane.b32.xlu1 %v27_v0, %s433_s5  ;;  %54 = vrot.lane.b32.xlu0 %v27_v0, %s434_s1  ;;  %s457_s26 = smov [#allocation6]  }
  0x20   :  { %s302_s27 = sshll.u32 %s457_s26, 4  ;;  %s303_s27 = int_to_ptr.vmem [resolvable:$true] %s302_s27 }
  0x21   :  { %s400_s28 = scalar_lea.vmem %s303_s27, 256  ;;  %p405_p9 = scmp.lt.s32.totalorder %s303_s27, %s303_s27 }
  0x22   :  { %p401_p8 = scmp.ne.s32.totalorder %s303_s27, %s400_s28  ;;  %p406_p10 = scmp.lt.s32.totalorder %s400_s28, %s400_s28 }
  0x23   :  { %124 = vrot.lane.b32.xlu1 %v314_v1, %s431_s30  ;;  %114 = vrot.lane.b32.xlu0 %v314_v1, %s432_s4 }
  0x24   :  { %p407_p11 = por %p406_p10, %p405_p9 }
  0x26   :  { %p408_p12 = pnand %p407_p11, %p401_p8 }
  0x27   :  { %144 = vrot.lane.b32.xlu1 %v314_v1, %s433_s5  ;;  %134 = vrot.lane.b32.xlu0 %v314_v1, %s434_s1 }
  0x2b   :  { %129 = vrot.lane.b32.xlu1 %v314_v1, %s435_s8  ;;  %119 = vrot.lane.b32.xlu0 %v314_v1, %s436_s9 }
  0x2f   :  { %149 = vrot.lane.b32.xlu1 %v314_v1, %s438_s10  ;;  %139 = vrot.lane.b32.xlu0 %v314_v1, %s439_s11 }
  0x33   :  { %71 = vrot.lane.b32.xlu0 %v27_v0, %s440_s12  ;;  %81 = vrot.lane.b32.xlu1 %v27_v0, %s441_s13 }
  0x37   :  { %91 = vrot.lane.b32.xlu0 %v27_v0, %s442_s0  ;;  %76 = vrot.lane.b32.xlu1 %v27_v0, %s443_s14 }
  0x3b   :  { %86 = vrot.lane.b32.xlu0 %v27_v0, %s444_s15  ;;  %96 = vrot.lane.b32.xlu1 %v27_v0, %s445_s16 }
  0x3f   :  { %159 = vrot.lane.b32.xlu0 %v314_v1, %s443_s14  ;;  %169 = vrot.lane.b32.xlu1 %v314_v1, %s444_s15 }
  0x43   :  { %179 = vrot.lane.b32.xlu0 %v314_v1, %s445_s16  ;;  %154 = vrot.lane.b32.xlu1 %v314_v1, %s446_s17 }
  0x47   :  { %164 = vrot.lane.b32.xlu0 %v314_v1, %s447_s18  ;;  %174 = vrot.lane.b32.xlu1 %v314_v1, %s448_s19 }
  0x4b   :  { %184 = vrot.lane.b32.xlu0 %v314_v1, %s449_s20  ;;  %101 = vrot.lane.b32.xlu1 %v27_v0, %s450_s21 }
  0x4f   :  { %106 = vrot.lane.b32.xlu0 %v27_v0, %s453_s22  ;;  %189 = vrot.lane.b32.xlu1 %v314_v1, %s453_s22 }
  0x53   :  { %194 = vrot.lane.b32.xlu0 %v314_v1, %s455_s25  ;;  %208 = vperm.xlu1 %376, %v205_v5  }
  0x85   :  { %v50_v6 = vpop.permute.xlu1 %49  ;;  %v30_v7 = vpop.permute.xlu0 %29 }
  0x86   :  { %53 = vst.msk [vmem:[#allocation2 + $0x8] sm:$0xf] %vm52_vm2, %v50_v6  ;;  %vm74_vm2 = vcmask 117760  }
  0x87   :  { %33 = vst.msk [vmem:[#allocation2] sm:$0xf] %vm32_vm3, %v30_v7  ;;  %vm84_vm3 = vcmask 109568  }
  0x89   :  { %v60_v8 = vpop.permute.xlu1 %59  ;;  %v40_v9 = vpop.permute.xlu0 %39 }
  0x8a   :  { %63 = vst.msk [vmem:[#allocation2 + $0xc] sm:$0xf] %vm62_vm4, %v60_v8  ;;  %vm94_vm4 = vcmask 101376  }
  0x8b   :  { %43 = vst.msk [vmem:[#allocation2 + $0x4] sm:$0xf] %vm42_vm5, %v40_v9  ;;  %vm79_vm5 = vcmask 126072  }
  0x8d   :  { %v45_v10 = vpop.permute.xlu1 %44  ;;  %v35_v11 = vpop.permute.xlu0 %34 }
  0x8e   :  { %48 = vst.msk [vmem:[#allocation2 + $0x4] sm:$0xf] %vm47_vm6, %v45_v10  ;;  %vm89_vm6 = vcmask 126064  }
  0x8f   :  { %38 = vst.msk [vmem:[#allocation2] sm:$0xf] %vm37_vm7, %v35_v11  ;;  %vm99_vm7 = vcmask 126056  }
  0x91   :  { %v65_v12 = vpop.permute.xlu1 %64  ;;  %v55_v13 = vpop.permute.xlu0 %54 }
  0x92   :  { %68 = vst.msk [vmem:[#allocation2 + $0xc] sm:$0xf] %vm67_vm8, %v65_v12  ;;  %vm162_vm8 = vcmask 248960  }
  0x93   :  { %58 = vst.msk [vmem:[#allocation2 + $0x8] sm:$0xf] %vm57_vm9, %v55_v13  ;;  %vm172_vm9 = vcmask 240768  }
  0x95   :  { %v125_v14 = vpop.permute.xlu1 %124  ;;  %v115_v15 = vpop.permute.xlu0 %114 }
  0x96   :  { %128 = vst.msk [vmem:[#allocation2 + $0x4] sm:$0xf] %vm127_vm10, %v125_v14  ;;  %vm182_vm10 = vcmask 232576  }
  0x97   :  { %118 = vst.msk [vmem:[#allocation2] sm:$0xf] %vm117_vm11, %v115_v15  ;;  %vm157_vm11 = vcmask 257152  }
  0x99   :  { %v145_v16 = vpop.permute.xlu1 %144  ;;  %v135_v17 = vpop.permute.xlu0 %134 }
  0x9a   :  { %148 = vst.msk [vmem:[#allocation2 + $0xc] sm:$0xf] %vm147_vm12, %v145_v16  ;;  %vm167_vm12 = vcmask 257272  }
  0x9b   :  { %138 = vst.msk [vmem:[#allocation2 + $0x8] sm:$0xf] %vm137_vm13, %v135_v17  ;;  %vm177_vm13 = vcmask 257264  }
  0x9d   :  { %v130_v18 = vpop.permute.xlu1 %129  ;;  %v120_v19 = vpop.permute.xlu0 %119 }
  0x9e   :  { %133 = vst.msk [vmem:[#allocation2 + $0x4] sm:$0xf] %vm132_vm14, %v130_v18  ;;  %vm187_vm14 = vcmask 257256  }
  0x9f   :  { %123 = vst.msk [vmem:[#allocation2] sm:$0xf] %vm122_vm15, %v120_v19  ;;  %vm104_vm15 = vcmask 93184  }
  0xa1   :  { %v150_v20 = vpop.permute.xlu1 %149  ;;  %v140_v21 = vpop.permute.xlu0 %139 }
  0xa2   :  { %153 = vst.msk [vmem:[#allocation2 + $0xc] sm:$0xf] %vm152_vm0, %v150_v20  ;;  %vm109_vm0 = vcmask 126048  }
  0xa3   :  { %143 = vst.msk [vmem:[#allocation2 + $0x8] sm:$0xf] %vm142_vm1, %v140_v21  ;;  %vm192_vm1 = vcmask 224384  }
  0xa5   :  { %v72_v22 = vpop.permute.xlu0 %71  ;;  %v82_v23 = vpop.permute.xlu1 %81 }
  0xa6   :  { %75 = vst.msk [vmem:[#allocation2 + $0x14] sm:$0xf] %vm74_vm2, %v72_v22  ;;  %v200_v26 = vld [vmem:[#allocation2] sm:$0xff]  ;;  %vm197_vm2 = vcmask 257248  }
  0xa7   :  { %85 = vst.msk [vmem:[#allocation2 + $0x18] sm:$0xf] %vm84_vm3, %v82_v23  ;;  %vm215_vm3 = vcmask 1043456  }
  0xa9   :  { %v92_v24 = vpop.permute.xlu0 %91  ;;  %v77_v25 = vpop.permute.xlu1 %76 }
  0xaa   :  { %v201_v27 = vld [vmem:[#allocation2 + $0x8] sm:$0xff]  ;;  %95 = vst.msk [vmem:[#allocation2 + $0x1c] sm:$0xf] %vm94_vm4, %v92_v24  ;;  %vm211_vm4 = vcmask 293888  }
  0xab   :  { %80 = vst.msk [vmem:[#allocation2 + $0x14] sm:$0xf] %vm79_vm5, %v77_v25  ;;  %v337_v28 = vpack.c.bf16 %v201_v27, %v200_v26  ;;  %vm289_vm5 = vcmask 130048  }
  0xad   :  { %338 = vmatpush3.bf16.msra.mxu0 %v337_v28  ;;  %v87_v29 = vpop.permute.xlu0 %86  ;;  %v97_v30 = vpop.permute.xlu1 %96 }
  0xae   :  { %339 = vmatprep.subr.bf16.mxu0 %v437_v2  ;;  %90 = vst.msk [vmem:[#allocation2 + $0x18] sm:$0xf] %vm89_vm6, %v87_v29 }
  0xaf   :  { %100 = vst.msk [vmem:[#allocation2 + $0x1c] sm:$0xf] %vm99_vm7, %v97_v30 }
  0xb1   :  { %v160_v31 = vpop.permute.xlu0 %159  ;;  %v170_v32 = vpop.permute.xlu1 %169 }
  0xb2   :  { %163 = vst.msk [vmem:[#allocation2 + $0x14] sm:$0xf] %vm162_vm8, %v160_v31 }
  0xb3   :  { %173 = vst.msk [vmem:[#allocation2 + $0x18] sm:$0xf] %vm172_vm9, %v170_v32 }
  0xb5   :  { %v180_v33 = vpop.permute.xlu0 %179  ;;  %v155_v34 = vpop.permute.xlu1 %154 }
  0xb6   :  { %183 = vst.msk [vmem:[#allocation2 + $0x1c] sm:$0xf] %vm182_vm10, %v180_v33 }
  0xb7   :  { %158 = vst.msk [vmem:[#allocation2 + $0x10] sm:$0xf] %vm157_vm11, %v155_v34 }
  0xb9   :  { %v165_v35 = vpop.permute.xlu0 %164  ;;  %v175_v36 = vpop.permute.xlu1 %174 }
  0xba   :  { %168 = vst.msk [vmem:[#allocation2 + $0x14] sm:$0xf] %vm167_vm12, %v165_v35 }
  0xbb   :  { %178 = vst.msk [vmem:[#allocation2 + $0x18] sm:$0xf] %vm177_vm13, %v175_v36 }
  0xbd   :  { %v185_v37 = vpop.permute.xlu0 %184  ;;  %v102_v38 = vpop.permute.xlu1 %101 }
  0xbe   :  { %188 = vst.msk [vmem:[#allocation2 + $0x1c] sm:$0xf] %vm187_vm14, %v185_v37 }
  0xbf   :  { %105 = vst.msk [vmem:[#allocation2 + $0x20] sm:$0xf] %vm104_vm15, %v102_v38 }
  0xc1   :  { %v107_v39 = vpop.permute.xlu0 %106  ;;  %v190_v40 = vpop.permute.xlu1 %189  ;;  %v202_v42 = vld [vmem:[#allocation2 + $0x10] sm:$0xff] }
  0xc2   :  { %110 = vst.msk [vmem:[#allocation2 + $0x20] sm:$0xf] %vm109_vm0, %v107_v39 }
  0xc3   :  { %193 = vst.msk [vmem:[#allocation2 + $0x20] sm:$0xf] %vm192_vm1, %v190_v40 }
  0xc5   :  { %v195_v41 = vpop.permute.xlu0 %194  ;;  %v203_v43 = vld [vmem:[#allocation2 + $0x18] sm:$0xff] }
  0xc6   :  { %198 = vst.msk [vmem:[#allocation2 + $0x20] sm:$0xf] %vm197_vm2, %v195_v41  ;;  %v340_v44 = vpack.c.bf16 %v203_v43, %v202_v42 }
  0xc8   :  { %341 = vmatpush3.bf16.msra.mxu0 %v340_v44 }
  0xc9   :  { %331 = vmatprep.subr.mxu0 %v452_v3 }
  0xcd   :  { %v204_v46 = vld [vmem:[#allocation2 + $0x20] sm:$0xf] }
  0xce   :  { %332 = vmatpush3.msk.msra.mxu0 %vm215_vm3, %v204_v46 }
  0xcf   :  { %334 = vmatmul.mubr.msk.f32.vlgmr.msra.gmra.mrb[0].mxu0 %vm211_vm4, %v199_v45 }
  0xd2   :  { %v209_v47 = vpop.permute.xlu1 %208 }
 0x1a2   :  { %v285_v48 = vpop.f32.mrb[0].mxu0 }
 0x1a3   :  { %v286_v49 = vadd.f32 %v285_v48, %v209_v47  ;;  %v335_v50 = vpop.f32.mrb[1].mxu0 }
 0x1a5   :  { %292 = vrot.lane.b32.xlu0 %v286_v49, %s456_s2  ;;  %290 = vst.msk [vmem:[#allocation6] sm:$0xff] %vm289_vm5, %v286_v49 }
 0x217   :  { %v293_v51 = vpop.permute.xlu0 %292 }
 0x218   :  { %296 = vst.msk [vmem:[#allocation6 + $0x8] sm:$0xff] %vm289_vm5, %v293_v51 }
 0x219   :  { %411 = shalt.err (!%p408_p12)
}
 0x21a   :  { %s412_s4 = scalar_lea.hbm %s520_s3, 256 }
 0x21b   :  { %p413_p13 = scmp.ne.s32.totalorder %s520_s3, %s412_s4  ;;  %p416_p0 = scmp.lt.u32.totalorder %s412_s4, %s520_s3 }
 0x21d   :  { %p418_p1 = pnand %p416_p0, %p413_p13 }
 0x21f   :  { %421 = shalt.err (!%p418_p1)
}
 0x220   :  { %s458_s8 = smov 128   ;;  %s459_s9 = smov 8  }
 0x221   :  { %308 = dma.vmem_to_hbm [thread:$0]  %s303_s27, 256, %s520_s3, [#allocation5], %s458_s8, %s458_s8, %s459_s9  }
 0x222   :  { %424 = dma.done.wait [#allocation5], 256  }
 0x223   :  { %425 = vsyncadd [#allocation5], 4294967040 }
 0x224   :  { %312 = vsyncpa [#allocation4], 1 }
 0x225   :  { %313 = vsyncpa [#allocation5], 1 }

</bundles_post_ra>
